<compile_context>
chip_gen: v5e
topology: v5e:2x2
jax: 0.10.0
libtpu: 0.0.40
codegen_flags: <defaults>
</compile_context>

<pallas_src>
import math

import jax
import jax.numpy as jnp
from jax.experimental import pallas as pl
from jax.experimental.pallas import tpu as pltpu


_LANE = 128
_SUBLANE = 8


def _round_up(x, m):
    return ((x + m - 1) // m) * m


def _num_tensorcores_per_chip():
    """Best-effort detection of TensorCores per chip (megacore / v7x => 2)."""
    try:
        kind = jax.devices()[0].device_kind.lower()
    except Exception:
        return 1
    if any(tag in kind for tag in ("v7", "v4", "v5p")):
        return 2
    return 1


def _choose_row_tile(n, num_tc, max_tm=1024):
    """Row tile: as large as possible on 1-TC chips; >=4 even steps on 2-TC."""
    n8 = _round_up(max(n, 1), _SUBLANE)
    if num_tc <= 1:
        return min(max_tm, n8)
    # Dual-TC: aim for at least 4 (and an even number of) grid steps so each
    # core gets >= 2 iterations and DMA/compute overlap is preserved.
    tm = _round_up(pl.cdiv(n8, 4), _SUBLANE)
    tm = max(min(tm, max_tm), _SUBLANE)
    steps = pl.cdiv(n8, tm)
    if steps > 1 and steps % 2 == 1:
        tm = max(_round_up(pl.cdiv(n8, steps + 1), _SUBLANE), _SUBLANE)
    return tm


def _derive_vmem_limit(tm, f_in, layer_shapes, out_feats, dtype_bytes=4):
    """VMEM budget from actual tile sizes (accounting for (8,128) padding)."""
    def buf_bytes(rows, cols):
        return _round_up(rows, _SUBLANE) * _round_up(cols, _LANE) * dtype_bytes

    total = 2 * buf_bytes(tm, f_in)          # double-buffered input blocks
    total += 2 * buf_bytes(tm, out_feats)    # double-buffered output blocks
    for fi, fo in layer_shapes:              # resident weights/biases (x2 bufs)
        total += 2 * (buf_bytes(fi, fo) + buf_bytes(1, fo))
    limit = total * 3 + (8 << 20)            # generous headroom for temporaries
    return int(min(max(limit, 16 << 20), 48 << 20))  # stays under v7x 64 MiB


def _make_fused_mlp_kernel(num_layers):
    """Kernel: x -> [Linear -> ReLU] * num_layers, all inside one row tile."""

    def kernel(*refs):
        x_ref = refs[0]
        o_ref = refs[-1]
        h = x_ref[...].astype(jnp.float32)
        for i in range(num_layers):
            w_ref = refs[1 + 2 * i]   # (f_in, f_out), resident in VMEM
            b_ref = refs[2 + 2 * i]   # (1, f_out)
            y = jnp.dot(h.astype(w_ref.dtype), w_ref[...],
                        preferred_element_type=jnp.float32)
            y = y + b_ref[...].astype(jnp.float32)
            h = jnp.maximum(y, 0.0)   # ReLU
        o_ref[...] = h.astype(o_ref.dtype)

    return kernel


def fused_mlp_forward(x, params, out_feats, *, max_tm=1024):
    """y = relu(...relu(x @ W0 + b0)... @ Wk + bk), one pallas_call."""
    n, f_in = x.shape
    num_layers = len(params)
    layer_shapes = [w.shape for (w, _) in params]
    assert layer_shapes[0][0] == f_in
    assert layer_shapes[-1][1] == out_feats

    num_tc = _num_tensorcores_per_chip()
    tm = _choose_row_tile(n, num_tc, max_tm)
    n_p = _round_up(n, tm)

    # Only pad rows (cheap, usually a no-op); never lane-pad the HBM streams.
    x_in = x if n_p == n else jnp.pad(x, ((0, n_p - n), (0, 0)))

    in_specs = [pl.BlockSpec((tm, f_in), lambda i: (i, 0))]
    flat_args = [x_in]
    for w, b2d in params:
        fi, fo = w.shape
        # Constant block index => DMA'd once, resident across all grid steps.
        in_specs.append(pl.BlockSpec((fi, fo), lambda i: (0, 0)))
        in_specs.append(pl.BlockSpec((1, fo), lambda i: (0, 0)))
        flat_args.extend([w, b2d])

    out = pl.pallas_call(
        _make_fused_mlp_kernel(num_layers),
        out_shape=jax.ShapeDtypeStruct((n_p, out_feats), x.dtype),
        grid_spec=pltpu.PrefetchScalarGridSpec(
            num_scalar_prefetch=0,
            grid=(n_p // tm,),
            in_specs=in_specs,
            out_specs=pl.BlockSpec((tm, out_feats), lambda i: (i, 0)),
        ),
        compiler_params=pltpu.CompilerParams(
            dimension_semantics=("parallel",),
            vmem_limit_bytes=_derive_vmem_limit(tm, f_in, layer_shapes, out_feats),
        ),
    )(*flat_args)

    return out if n_p == n else out[:n]


class MLP:
    """JAX/Pallas port of EvolveGCN's MLP module (activation = ReLU)."""

    def __init__(self, key, num_layers, feats_per_node, layer_1_feats,
                 layer_2_feats, dtype=jnp.float32):
        self.num_layers = num_layers
        self.dtype = dtype
        self.out_feats = layer_1_feats if num_layers == 1 else layer_2_feats
        self.params = []   # (W^T (in,out), b (1,out)) -- unpadded, kernel-ready
        for i in range(num_layers):
            if i == 0:
                f_in, f_out = feats_per_node, layer_1_feats
            else:
                f_in, f_out = layer_1_feats, layer_2_feats
            key, kw, kb = jax.random.split(key, 3)
            # Deterministic init mirroring nn.Linear's uniform(-1/sqrt(in), 1/sqrt(in))
            bound = 1.0 / math.sqrt(f_in)
            w = jax.random.uniform(kw, (f_out, f_in), dtype, -bound, bound)
            b = jax.random.uniform(kb, (f_out,), dtype, -bound, bound)
            self.params.append((jnp.asarray(w.T), b.reshape(1, f_out)))

    def __call__(self, A_list, Nodes_list, nodes_mask_list):
        # A_list and nodes_mask_list are unused in the reference forward pass.
        node_feats = Nodes_list[-1]
        return fused_mlp_forward(node_feats, self.params, self.out_feats)


if __name__ == "__main__":
    key = jax.random.PRNGKey(0)
    k_model, k_x0, k_x1 = jax.random.split(key, 3)

    # Small, MLP-consistent shapes
    num_nodes = 128
    feats_per_node = 32
    layer_1_feats = 64
    layer_2_feats = 32
    num_layers = 2

    mlp = MLP(k_model, num_layers, feats_per_node, layer_1_feats, layer_2_feats)

    # Nodes_list: list of node-feature matrices over time; only [-1] is used.
    Nodes_list = [
        jax.random.normal(k_x0, (num_nodes, feats_per_node), jnp.float32),
        jax.random.normal(k_x1, (num_nodes, feats_per_node), jnp.float32),
    ]
    A_list = [None, None]           # unused by forward
    nodes_mask_list = [None, None]  # unused by forward

    out = mlp(A_list, Nodes_list, nodes_mask_list)
    out = jax.block_until_ready(out)

    assert out.shape == (num_nodes, layer_2_feats), out.shape

    # Cross-check against a pure-JAX reference of the same math.
    ref = Nodes_list[-1]
    for w_t, b2d in mlp.params:
        ref = jnp.maximum(ref @ w_t + b2d, 0.0)
    assert jnp.allclose(out, ref, atol=1e-5, rtol=1e-5)

    print("KERNEL_OK")
</pallas_src>

<mosaic_0001>
module attributes {stable_mosaic.version = 11 : i64} {
  func.func @kernel(%arg0: i32, %arg1: memref<128x32xf32, #tpu.memory_space<vmem>>, %arg2: memref<32x64xf32, #tpu.memory_space<vmem>>, %arg3: memref<1x64xf32, #tpu.memory_space<vmem>>, %arg4: memref<64x32xf32, #tpu.memory_space<vmem>>, %arg5: memref<1x32xf32, #tpu.memory_space<vmem>>, %arg6: memref<128x32xf32, #tpu.memory_space<vmem>>) attributes {dimension_semantics = [#tpu.dimension_semantics<parallel>], iteration_bounds = array<i64: 1>, scalar_prefetch = 0 : i64, scratch_operands = 0 : i64, tpu.core_type = #tpu.core_type<tc>, window_params = [{transform_indices = @transform_0, window_bounds = array<i64: 128, 32>}, {pipeline_mode = #tpu.pipeline_mode<synchronous>, transform_indices = @transform_1, window_bounds = array<i64: 32, 64>}, {pipeline_mode = #tpu.pipeline_mode<synchronous>, transform_indices = @transform_2, window_bounds = array<i64: 1, 64>}, {pipeline_mode = #tpu.pipeline_mode<synchronous>, transform_indices = @transform_3, window_bounds = array<i64: 64, 32>}, {pipeline_mode = #tpu.pipeline_mode<synchronous>, transform_indices = @transform_4, window_bounds = array<i64: 1, 32>}, {transform_indices = @transform_5, window_bounds = array<i64: 128, 32>}]} {
    %c0 = arith.constant 0 : index
    %c0_0 = arith.constant 0 : index
    %0 = vector.load %arg1[%c0, %c0_0] : memref<128x32xf32, #tpu.memory_space<vmem>>, vector<128x32xf32>
    %c0_1 = arith.constant 0 : index
    %c0_2 = arith.constant 0 : index
    %1 = vector.load %arg2[%c0_1, %c0_2] : memref<32x64xf32, #tpu.memory_space<vmem>>, vector<32x64xf32>
    %cst = arith.constant dense<0.000000e+00> : vector<128x64xf32>
    %2 = tpu.matmul %0, %1, %cst {dimension_numbers = #tpu.dot_dimension_numbers<[1], [0], [0], [1], [0, 0, 1, 1], [], []>} : vector<128x32xf32>, vector<32x64xf32>, vector<128x64xf32> -> vector<128x64xf32>
    %c0_3 = arith.constant 0 : index
    %c0_4 = arith.constant 0 : index
    %3 = vector.load %arg3[%c0_3, %c0_4] : memref<1x64xf32, #tpu.memory_space<vmem>>, vector<1x64xf32>
    %4 = vector.broadcast %3 : vector<1x64xf32> to vector<128x64xf32>
    %5 = arith.addf %2, %4 : vector<128x64xf32>
    %cst_5 = arith.constant 0.000000e+00 : f32
    %6 = vector.broadcast %cst_5 : f32 to vector<128x64xf32>
    %7 = arith.maximumf %5, %6 : vector<128x64xf32>
    %c0_6 = arith.constant 0 : index
    %c0_7 = arith.constant 0 : index
    %8 = vector.load %arg4[%c0_6, %c0_7] : memref<64x32xf32, #tpu.memory_space<vmem>>, vector<64x32xf32>
    %cst_8 = arith.constant dense<0.000000e+00> : vector<128x32xf32>
    %9 = tpu.matmul %7, %8, %cst_8 {dimension_numbers = #tpu.dot_dimension_numbers<[1], [0], [0], [1], [0, 0, 1, 1], [], []>} : vector<128x64xf32>, vector<64x32xf32>, vector<128x32xf32> -> vector<128x32xf32>
    %c0_9 = arith.constant 0 : index
    %c0_10 = arith.constant 0 : index
    %10 = vector.load %arg5[%c0_9, %c0_10] : memref<1x32xf32, #tpu.memory_space<vmem>>, vector<1x32xf32>
    %11 = vector.broadcast %10 : vector<1x32xf32> to vector<128x32xf32>
    %12 = arith.addf %9, %11 : vector<128x32xf32>
    %cst_11 = arith.constant 0.000000e+00 : f32
    %13 = vector.broadcast %cst_11 : f32 to vector<128x32xf32>
    %14 = arith.maximumf %12, %13 : vector<128x32xf32>
    %c0_12 = arith.constant 0 : index
    %c0_13 = arith.constant 0 : index
    %15 = vector.load %arg6[%c0_12, %c0_13] : memref<128x32xf32, #tpu.memory_space<vmem>>, vector<128x32xf32>
    tpu.vector_store %arg6[%c0_12, %c0_13], %14 {strides = array<i32>} : memref<128x32xf32, #tpu.memory_space<vmem>>, vector<128x32xf32>,
    return
  }
  func.func @transform_0(%arg0: i32) -> (i32, i32) {
    %c0_i32 = arith.constant 0 : i32
    %c0_i32_0 = arith.constant 0 : i32
    return %arg0, %c0_i32 : i32, i32
  }
  func.func @transform_1(%arg0: i32) -> (i32, i32) {
    %c0_i32 = arith.constant 0 : i32
    %c0_i32_0 = arith.constant 0 : i32
    %c0_i32_1 = arith.constant 0 : i32
    return %c0_i32, %c0_i32_0 : i32, i32
  }
  func.func @transform_2(%arg0: i32) -> (i32, i32) {
    %c0_i32 = arith.constant 0 : i32
    %c0_i32_0 = arith.constant 0 : i32
    %c0_i32_1 = arith.constant 0 : i32
    return %c0_i32, %c0_i32_0 : i32, i32
  }
  func.func @transform_3(%arg0: i32) -> (i32, i32) {
    %c0_i32 = arith.constant 0 : i32
    %c0_i32_0 = arith.constant 0 : i32
    %c0_i32_1 = arith.constant 0 : i32
    return %c0_i32, %c0_i32_0 : i32, i32
  }
  func.func @transform_4(%arg0: i32) -> (i32, i32) {
    %c0_i32 = arith.constant 0 : i32
    %c0_i32_0 = arith.constant 0 : i32
    %c0_i32_1 = arith.constant 0 : i32
    return %c0_i32, %c0_i32_0 : i32, i32
  }
  func.func @transform_5(%arg0: i32) -> (i32, i32) {
    %c0_i32 = arith.constant 0 : i32
    %c0_i32_0 = arith.constant 0 : i32
    return %arg0, %c0_i32 : i32, i32
  }
}

</mosaic_0001>

<bundles_post_ra>
// kernel: tpu_custom_call.1
= control target key start
LH: loop header
LB: loop body
LE: loop exit
PB: predicated region body
PF: predicated region fallthrough
CT: control target
= control target key end

     0   :  { %vm44_vm0 = vcmask 261120   ;;  %vm186_vm1 = vcmask 523264   ;;  %s634_s1 = inlined_call_operand.vmem [shape: f32[32,64], index: 1, kind: input, shape index: {}]   ;;  %s635_s0 = inlined_call_operand.vmem [shape: f32[128,32], index: 0, kind: input, shape index: {}]   ;;  %s636_s2 = inlined_call_operand.vmem [shape: f32[1,64], index: 2, kind: input, shape index: {}]   ;;  %s637_s3 = inlined_call_operand.vmem [shape: f32[64,32], index: 3, kind: input, shape index: {}]   ;;  %s638_s4 = inlined_call_operand.vmem [shape: f32[1,32], index: 4, kind: input, shape index: {}]   ;;  %s639_s5 = inlined_call_operand.vmem [shape: f32[128,32], index: 5, kind: output, shape index: {}]  }
   0x1   :  { %v39_v0 = vld [vmem:[%s634_s1 + $0x18] sm:$0xff]  ;;  %v38_v1 = vld [vmem:[%s634_s1 + $0x10] sm:$0xff]  ;;  %v37_v2 = vld [vmem:[%s634_s1 + $0x8] sm:$0xff] }
   0x2   :  { %105 = vmatpush.msra.mxu0 %v39_v0  ;;  %368 = vmatpush.msra.mxu3 %v39_v0  ;;  %v36_v3 = vld [vmem:[%s634_s1] sm:$0xff]  ;;  %v21_v5 = vld [vmem:[%s635_s0 + $0x8] sm:$0xff]  ;;  %v22_v6 = vld [vmem:[%s635_s0 + $0x10] sm:$0xff] }
   0x3   :  { %v20_v4 = vld [vmem:[%s635_s0] sm:$0xff]  ;;  %v23_v7 = vld [vmem:[%s635_s0 + $0x18] sm:$0xff]  ;;  %v29_v9 = vld [vmem:[%s635_s0 + $0x48] sm:$0xff] }
   0x4   :  { %106 = vmatpush.msra.mxu0 %v38_v1  ;;  %369 = vmatpush.msra.mxu3 %v38_v1  ;;  %v24_v8 = vld [vmem:[%s635_s0 + $0x20] sm:$0xff]  ;;  %v25_v10 = vld [vmem:[%s635_s0 + $0x28] sm:$0xff]  ;;  %v30_v11 = vld [vmem:[%s635_s0 + $0x50] sm:$0xff] }
   0x5   :  { %v26_v12 = vld [vmem:[%s635_s0 + $0x30] sm:$0xff]  ;;  %v31_v13 = vld [vmem:[%s635_s0 + $0x58] sm:$0xff]  ;;  %v179_v16 = vld [vmem:[%s637_s3 + $0x28] sm:$0xff] }
   0x6   :  { %107 = vmatpush.msra.mxu0 %v37_v2  ;;  %370 = vmatpush.msra.mxu3 %v37_v2  ;;  %v181_v14 = vld [vmem:[%s637_s3 + $0x38] sm:$0xff]  ;;  %v180_v15 = vld [vmem:[%s637_s3 + $0x30] sm:$0xff]  ;;  %v178_v18 = vld [vmem:[%s637_s3 + $0x20] sm:$0xff] }
   0x7   :  { %243 = vmatpush.msra.mxu1 %v181_v14  ;;  %372 = vmatpush.msra.mxu2 %v181_v14  ;;  %v27_v17 = vld [vmem:[%s635_s0 + $0x38] sm:$0xff]  ;;  %v32_v19 = vld [vmem:[%s635_s0 + $0x60] sm:$0xff]  ;;  %v33_v22 = vld [vmem:[%s635_s0 + $0x68] sm:$0xff] }
   0x8   :  { %108 = vmatpush.msra.mxu0 %v36_v3  ;;  %371 = vmatpush.msra.mxu3 %v36_v3  ;;  %v177_v20 = vld [vmem:[%s637_s3 + $0x18] sm:$0xff]  ;;  %v28_v21 = vld [vmem:[%s635_s0 + $0x40] sm:$0xff]  ;;  %v34_v23 = vld [vmem:[%s635_s0 + $0x70] sm:$0xff] }
   0x9   :  { %336 = vmatmul.msk.f32.vlgmr.msra.gmra.mxu0 %vm44_vm0, %v20_v4  ;;  %345 = vmatmul.msk.f32.vlgmr.msra.gmra.mxu3 %vm44_vm0, %v29_v9  ;;  %v35_v24 = vld [vmem:[%s635_s0 + $0x78] sm:$0xff]  ;;  %v176_v25 = vld [vmem:[%s637_s3 + $0x10] sm:$0xff]  ;;  %v175_v26 = vld [vmem:[%s637_s3 + $0x8] sm:$0xff] }
   0xa   :  { %244 = vmatpush.msra.mxu1 %v180_v15  ;;  %373 = vmatpush.msra.mxu2 %v180_v15  ;;  %v174_v27 = vld [vmem:[%s637_s3] sm:$0xff] }
   0xb   :  { %v515_v28 = vld [vmem:[%s636_s2] ss:$0 sm:$0xff] }
   0xc   :  { %245 = vmatpush.msra.mxu1 %v179_v16  ;;  %374 = vmatpush.msra.mxu2 %v179_v16 }
   0xe   :  { %246 = vmatpush.msra.mxu1 %v178_v18  ;;  %375 = vmatpush.msra.mxu2 %v178_v18 }
  0x10   :  { %247 = vmatpush.msra.mxu1 %v177_v20  ;;  %376 = vmatpush.msra.mxu2 %v177_v20 }
  0x11   :  { %337 = vmatmul.msk.f32.gmra.mxu0 %vm44_vm0, %v21_v5  ;;  %346 = vmatmul.msk.f32.gmra.mxu3 %vm44_vm0, %v30_v11 }
  0x12   :  { %248 = vmatpush.msra.mxu1 %v176_v25  ;;  %377 = vmatpush.msra.mxu2 %v176_v25 }
  0x14   :  { %249 = vmatpush.msra.mxu1 %v175_v26  ;;  %378 = vmatpush.msra.mxu2 %v175_v26 }
  0x16   :  { %250 = vmatpush.msra.mxu1 %v174_v27  ;;  %379 = vmatpush.msra.mxu2 %v174_v27 }
  0x19   :  { %338 = vmatmul.msk.f32.gmra.mxu0 %vm44_vm0, %v22_v6  ;;  %347 = vmatmul.msk.f32.gmra.mxu3 %vm44_vm0, %v31_v13  ;;  %v552_v13 = vld [vmem:[%s638_s4] ss:$0 sm:$0xff] }
  0x21   :  { %339 = vmatmul.msk.f32.gmra.mxu0 %vm44_vm0, %v23_v7  ;;  %348 = vmatmul.msk.f32.gmra.mxu3 %vm44_vm0, %v32_v19 }
  0x29   :  { %340 = vmatmul.msk.f32.gmra.mxu0 %vm44_vm0, %v24_v8  ;;  %349 = vmatmul.msk.f32.gmra.mxu3 %vm44_vm0, %v33_v22 }
  0x31   :  { %341 = vmatmul.msk.f32.gmra.mxu0 %vm44_vm0, %v25_v10  ;;  %350 = vmatmul.msk.f32.gmra.mxu3 %vm44_vm0, %v34_v23 }
  0x39   :  { %342 = vmatmul.msk.f32.gmra.mxu0 %vm44_vm0, %v26_v12  ;;  %351 = vmatmul.msk.f32.gmra.mxu3 %vm44_vm0, %v35_v24 }
  0x41   :  { %343 = vmatmul.msk.f32.gmra.mxu0 %vm44_vm0, %v27_v17 }
  0x49   :  { %344 = vmatmul.msk.f32.gmra.mxu0 %vm44_vm0, %v28_v21 }
  0x86   :  { %v110_v29 = vpop.f32.mrf.mxu0 }
  0x87   :  { %v111_v30 = vadd.f32 %v515_v28, %v110_v29 }
  0x89   :  { %v158_v31 = vmax.f32 %v111_v30, 0.0 }
  0x8b   :  { %352 = vmatmul.msk.f32.vlgmr.msra.gmra.mxu1 %vm186_vm1, %v158_v31 }
  0x8c   :  { %v137_v50 = vpop.f32.mrf.mxu3 }
  0x8d   :  { %v138_v58 = vadd.f32 %v515_v28, %v137_v50 }
  0x8e   :  { %v113_v32 = vpop.f32.mrf.mxu0 }
  0x8f   :  { %v114_v33 = vadd.f32 %v515_v28, %v113_v32  ;;  %v167_v59 = vmax.f32 %v138_v58, 0.0 }
  0x91   :  { %v159_v34 = vmax.f32 %v114_v33, 0.0 }
  0x93   :  { %353 = vmatmul.msk.f32.gmra.mxu1 %vm186_vm1, %v159_v34 }
  0x94   :  { %v140_v55 = vpop.f32.mrf.mxu3 }
  0x95   :  { %v141_v61 = vadd.f32 %v515_v28, %v140_v55 }
  0x96   :  { %v116_v35 = vpop.f32.mrf.mxu0 }
  0x97   :  { %v117_v36 = vadd.f32 %v515_v28, %v116_v35  ;;  %v168_v62 = vmax.f32 %v141_v61, 0.0 }
  0x99   :  { %v160_v37 = vmax.f32 %v117_v36, 0.0 }
  0x9b   :  { %354 = vmatmul.msk.f32.gmra.mxu1 %vm186_vm1, %v160_v37 }
  0x9c   :  { %v143_v60 = vpop.f32.mrf.mxu3 }
  0x9d   :  { %v144_v0 = vadd.f32 %v515_v28, %v143_v60 }
  0x9e   :  { %v119_v38 = vpop.f32.mrf.mxu0 }
  0x9f   :  { %v120_v39 = vadd.f32 %v515_v28, %v119_v38  ;;  %v169_v1 = vmax.f32 %v144_v0, 0.0 }
  0xa1   :  { %v161_v40 = vmax.f32 %v120_v39, 0.0 }
  0xa3   :  { %355 = vmatmul.msk.f32.gmra.mxu1 %vm186_vm1, %v161_v40 }
  0xa4   :  { %v146_v63 = vpop.f32.mrf.mxu3 }
  0xa5   :  { %v147_v2 = vadd.f32 %v515_v28, %v146_v63 }
  0xa6   :  { %v122_v41 = vpop.f32.mrf.mxu0 }
  0xa7   :  { %v123_v42 = vadd.f32 %v515_v28, %v122_v41  ;;  %v170_v4 = vmax.f32 %v147_v2, 0.0 }
  0xa9   :  { %v162_v43 = vmax.f32 %v123_v42, 0.0 }
  0xab   :  { %356 = vmatmul.msk.f32.gmra.mxu1 %vm186_vm1, %v162_v43 }
  0xac   :  { %v149_v3 = vpop.f32.mrf.mxu3 }
  0xad   :  { %v150_v5 = vadd.f32 %v515_v28, %v149_v3 }
  0xae   :  { %v125_v44 = vpop.f32.mrf.mxu0 }
  0xaf   :  { %v126_v45 = vadd.f32 %v515_v28, %v125_v44  ;;  %v171_v7 = vmax.f32 %v150_v5, 0.0 }
  0xb1   :  { %v163_v46 = vmax.f32 %v126_v45, 0.0 }
  0xb3   :  { %357 = vmatmul.msk.f32.gmra.mxu1 %vm186_vm1, %v163_v46 }
  0xb4   :  { %v152_v6 = vpop.f32.mrf.mxu3 }
  0xb5   :  { %v153_v8 = vadd.f32 %v515_v28, %v152_v6 }
  0xb6   :  { %v128_v47 = vpop.f32.mrf.mxu0 }
  0xb7   :  { %v129_v48 = vadd.f32 %v515_v28, %v128_v47  ;;  %v172_v9 = vmax.f32 %v153_v8, 0.0 }
  0xb9   :  { %v164_v49 = vmax.f32 %v129_v48, 0.0 }
  0xbb   :  { %358 = vmatmul.msk.f32.gmra.mxu1 %vm186_vm1, %v164_v49 }
  0xbc   :  { %v155_v10 = vpop.f32.mrf.mxu3 }
  0xbd   :  { %v156_v11 = vadd.f32 %v515_v28, %v155_v10 }
  0xbe   :  { %v131_v51 = vpop.f32.mrf.mxu0 }
  0xbf   :  { %v132_v52 = vadd.f32 %v515_v28, %v131_v51  ;;  %v173_v12 = vmax.f32 %v156_v11, 0.0 }
  0xc1   :  { %v165_v53 = vmax.f32 %v132_v52, 0.0 }
  0xc3   :  { %359 = vmatmul.msk.f32.gmra.mxu1 %vm186_vm1, %v165_v53 }
  0xc6   :  { %v134_v54 = vpop.f32.mrf.mxu0 }
  0xc7   :  { %v135_v56 = vadd.f32 %v515_v28, %v134_v54 }
  0xc9   :  { %v166_v57 = vmax.f32 %v135_v56, 0.0 }
  0xcb   :  { %360 = vmatmul.msk.f32.vlgmr.msra.gmra.mxu2 %vm186_vm1, %v166_v57 }
  0xd3   :  { %361 = vmatmul.msk.f32.gmra.mxu2 %vm186_vm1, %v167_v59 }
  0xdb   :  { %362 = vmatmul.msk.f32.gmra.mxu2 %vm186_vm1, %v168_v62 }
  0xe3   :  { %363 = vmatmul.msk.f32.gmra.mxu2 %vm186_vm1, %v169_v1 }
  0xeb   :  { %364 = vmatmul.msk.f32.gmra.mxu2 %vm186_vm1, %v170_v4 }
  0xf3   :  { %365 = vmatmul.msk.f32.gmra.mxu2 %vm186_vm1, %v171_v7 }
  0xfb   :  { %366 = vmatmul.msk.f32.gmra.mxu2 %vm186_vm1, %v172_v9 }
 0x103   :  { %367 = vmatmul.msk.f32.gmra.mxu2 %vm186_vm1, %v173_v12 }
 0x108   :  { %v252_v14 = vpop.f32.mrf.mxu1 }
 0x109   :  { %v253_v15 = vadd.f32 %v552_v13, %v252_v14 }
 0x10b   :  { %v300_v16 = vmax.f32 %v253_v15, 0.0 }
 0x10d   :  { %316 = vst.msk [vmem:[%s639_s5] sm:$0xff] %vm44_vm0, %v300_v16 }
 0x110   :  { %v255_v17 = vpop.f32.mrf.mxu1 }
 0x111   :  { %v256_v18 = vadd.f32 %v552_v13, %v255_v17 }
 0x113   :  { %v301_v19 = vmax.f32 %v256_v18, 0.0 }
 0x115   :  { %317 = vst.msk [vmem:[%s639_s5 + $0x8] sm:$0xff] %vm44_vm0, %v301_v19 }
 0x118   :  { %v258_v20 = vpop.f32.mrf.mxu1 }
 0x119   :  { %v259_v21 = vadd.f32 %v552_v13, %v258_v20 }
 0x11b   :  { %v302_v22 = vmax.f32 %v259_v21, 0.0 }
 0x11d   :  { %318 = vst.msk [vmem:[%s639_s5 + $0x10] sm:$0xff] %vm44_vm0, %v302_v22 }
 0x120   :  { %v261_v23 = vpop.f32.mrf.mxu1 }
 0x121   :  { %v262_v24 = vadd.f32 %v552_v13, %v261_v23 }
 0x123   :  { %v303_v25 = vmax.f32 %v262_v24, 0.0 }
 0x125   :  { %319 = vst.msk [vmem:[%s639_s5 + $0x18] sm:$0xff] %vm44_vm0, %v303_v25 }
 0x128   :  { %v264_v26 = vpop.f32.mrf.mxu1 }
 0x129   :  { %v265_v27 = vadd.f32 %v552_v13, %v264_v26 }
 0x12b   :  { %v304_v28 = vmax.f32 %v265_v27, 0.0 }
 0x12d   :  { %320 = vst.msk [vmem:[%s639_s5 + $0x20] sm:$0xff] %vm44_vm0, %v304_v28 }
 0x130   :  { %v267_v29 = vpop.f32.mrf.mxu1 }
 0x131   :  { %v268_v30 = vadd.f32 %v552_v13, %v267_v29 }
 0x133   :  { %v305_v31 = vmax.f32 %v268_v30, 0.0 }
 0x135   :  { %321 = vst.msk [vmem:[%s639_s5 + $0x28] sm:$0xff] %vm44_vm0, %v305_v31 }
 0x138   :  { %v270_v32 = vpop.f32.mrf.mxu1 }
 0x139   :  { %v271_v33 = vadd.f32 %v552_v13, %v270_v32 }
 0x13b   :  { %v306_v34 = vmax.f32 %v271_v33, 0.0 }
 0x13d   :  { %322 = vst.msk [vmem:[%s639_s5 + $0x30] sm:$0xff] %vm44_vm0, %v306_v34 }
 0x140   :  { %v273_v35 = vpop.f32.mrf.mxu1 }
 0x141   :  { %v274_v36 = vadd.f32 %v552_v13, %v273_v35 }
 0x143   :  { %v307_v37 = vmax.f32 %v274_v36, 0.0 }
 0x145   :  { %323 = vst.msk [vmem:[%s639_s5 + $0x38] sm:$0xff] %vm44_vm0, %v307_v37 }
 0x14e   :  { %v276_v38 = vpop.f32.mrf.mxu2 }
 0x14f   :  { %v277_v39 = vadd.f32 %v552_v13, %v276_v38 }
 0x151   :  { %v308_v40 = vmax.f32 %v277_v39, 0.0 }
 0x153   :  { %324 = vst.msk [vmem:[%s639_s5 + $0x40] sm:$0xff] %vm44_vm0, %v308_v40 }
 0x156   :  { %v279_v41 = vpop.f32.mrf.mxu2 }
 0x157   :  { %v280_v42 = vadd.f32 %v552_v13, %v279_v41 }
 0x159   :  { %v309_v43 = vmax.f32 %v280_v42, 0.0 }
 0x15b   :  { %325 = vst.msk [vmem:[%s639_s5 + $0x48] sm:$0xff] %vm44_vm0, %v309_v43 }
 0x15e   :  { %v282_v44 = vpop.f32.mrf.mxu2 }
 0x15f   :  { %v283_v45 = vadd.f32 %v552_v13, %v282_v44 }
 0x161   :  { %v310_v46 = vmax.f32 %v283_v45, 0.0 }
 0x163   :  { %326 = vst.msk [vmem:[%s639_s5 + $0x50] sm:$0xff] %vm44_vm0, %v310_v46 }
 0x166   :  { %v285_v47 = vpop.f32.mrf.mxu2 }
 0x167   :  { %v286_v48 = vadd.f32 %v552_v13, %v285_v47 }
 0x169   :  { %v311_v49 = vmax.f32 %v286_v48, 0.0 }
 0x16b   :  { %327 = vst.msk [vmem:[%s639_s5 + $0x58] sm:$0xff] %vm44_vm0, %v311_v49 }
 0x16e   :  { %v288_v50 = vpop.f32.mrf.mxu2 }
 0x16f   :  { %v289_v51 = vadd.f32 %v552_v13, %v288_v50 }
 0x171   :  { %v312_v52 = vmax.f32 %v289_v51, 0.0 }
 0x173   :  { %328 = vst.msk [vmem:[%s639_s5 + $0x60] sm:$0xff] %vm44_vm0, %v312_v52 }
 0x176   :  { %v291_v53 = vpop.f32.mrf.mxu2 }
 0x177   :  { %v292_v54 = vadd.f32 %v552_v13, %v291_v53 }
 0x179   :  { %v313_v55 = vmax.f32 %v292_v54, 0.0 }
 0x17b   :  { %329 = vst.msk [vmem:[%s639_s5 + $0x68] sm:$0xff] %vm44_vm0, %v313_v55 }
 0x17e   :  { %v294_v56 = vpop.f32.mrf.mxu2 }
 0x17f   :  { %v295_v57 = vadd.f32 %v552_v13, %v294_v56 }
 0x181   :  { %v314_v58 = vmax.f32 %v295_v57, 0.0 }
 0x183   :  { %330 = vst.msk [vmem:[%s639_s5 + $0x70] sm:$0xff] %vm44_vm0, %v314_v58 }
 0x186   :  { %v297_v59 = vpop.f32.mrf.mxu2 }
 0x187   :  { %v298_v60 = vadd.f32 %v552_v13, %v297_v59 }
 0x189   :  { %v315_v61 = vmax.f32 %v298_v60, 0.0 }
 0x18b   :  { %331 = vst.msk [vmem:[%s639_s5 + $0x78] sm:$0xff] %vm44_vm0, %v315_v61 }

</bundles_post_ra>
